<compile_context>
chip_gen: v7x
topology: tpu7x:2x2x1
jax: 0.10.0
libtpu: 0.0.40
codegen_flags: <defaults>
</compile_context>

<pallas_src>
import jax
import jax.numpy as jnp
from jax.experimental import pallas as pl
from jax.experimental.pallas import tpu as pltpu


def _epistemic_kernel(z_ref, p1_ref, p2_ref, phi_ref, logdet_ref):
    z = z_ref[...]                                   # [TB, P] f32
    P = z.shape[-1]
    in_dim = p1_ref.shape[0] - 1                     # = P
    hid = p2_ref.shape[0] - 1                        # = H

    # conditioner layer 1: Linear + Tanh (bias is the last row of p1)
    w1 = p1_ref[0:in_dim, :]                         # [P, H]
    b1 = p1_ref[in_dim:in_dim + 1, :]                # [1, H]
    h = jnp.tanh(jnp.dot(z, w1, preferred_element_type=jnp.float32) + b1)

    # conditioner layer 2: one fused matmul producing both halves
    w2 = p2_ref[0:hid, :]                            # [H, 2P]
    b2 = p2_ref[hid:hid + 1, :]                      # [1, 2P]
    params = jnp.dot(h, w2, preferred_element_type=jnp.float32) + b2  # [TB, 2P]

    scale = jnp.tanh(params[:, :P]) * 0.1            # [TB, P]
    shift = params[:, P:]                            # [TB, P]

    phi_ref[...] = z * jnp.exp(scale) + shift
    logdet_ref[...] = jnp.sum(scale, axis=-1, keepdims=True)


def simple_epistemic_forward(z_ep, w1, b1, w2, b2):
    """z_ep: [..., P] f32. w1: [P, H], b1: [H], w2: [H, 2P], b2: [2P].

    Returns (phi [..., P], log_det [...])."""
    lead_shape = z_ep.shape[:-1]
    P = z_ep.shape[-1]
    H = w1.shape[1]

    z2d = z_ep.reshape(-1, P)
    B = z2d.shape[0]

    # Pack each bias as an extra row of its weight matrix (parameter glue;
    # collapses 7 kernel inputs / DMAs into 3).
    p1 = jnp.concatenate([w1, b1.reshape(1, H)], axis=0)          # [P+1, H]
    p2 = jnp.concatenate([w2, b2.reshape(1, 2 * P)], axis=0)      # [H+1, 2P]

    # Batch tiling: one tile when B is small; 128-row (8-sublane aligned,
    # MXU-friendly) tiles when B grows.  Weights stay VMEM-resident across
    # tiles via a constant index_map.
    TB = B if B <= 128 else 128
    grid = (pl.cdiv(B, TB),)

    phi, logdet = pl.pallas_call(
        _epistemic_kernel,
        out_shape=(
            jax.ShapeDtypeStruct((B, P), jnp.float32),
            jax.ShapeDtypeStruct((B, 1), jnp.float32),
        ),
        grid=grid,
        in_specs=[
            pl.BlockSpec((TB, P), lambda i: (i, 0)),          # z tile
            pl.BlockSpec((P + 1, H), lambda i: (0, 0)),       # packed W1|b1 (resident)
            pl.BlockSpec((H + 1, 2 * P), lambda i: (0, 0)),   # packed W2|b2 (resident)
        ],
        out_specs=(
            pl.BlockSpec((TB, P), lambda i: (i, 0)),
            pl.BlockSpec((TB, 1), lambda i: (i, 0)),
        ),
        compiler_params=pltpu.CompilerParams(
            dimension_semantics=("parallel",),
        ),
    )(z2d, p1, p2)

    return phi.reshape(*lead_shape, P), logdet.reshape(lead_shape)


def init_params(key, param_dim, hidden_dim=32):
    k1, k2 = jax.random.split(key)
    w1 = 0.01 * jax.random.normal(k1, (param_dim, hidden_dim), dtype=jnp.float32)
    b1 = jnp.zeros((hidden_dim,), dtype=jnp.float32)
    w2 = 0.01 * jax.random.normal(k2, (hidden_dim, 2 * param_dim), dtype=jnp.float32)
    b2 = jnp.zeros((2 * param_dim,), dtype=jnp.float32)
    return w1, b1, w2, b2


def reference_forward(z_ep, w1, b1, w2, b2):
    P = z_ep.shape[-1]
    h = jnp.tanh(z_ep @ w1 + b1)
    params = h @ w2 + b2
    scale, shift = params[..., :P], params[..., P:]
    scale = jnp.tanh(scale) * 0.1
    phi = z_ep * jnp.exp(scale) + shift
    log_det = scale.sum(-1)
    return phi, log_det


if __name__ == "__main__":
    key = jax.random.PRNGKey(0)
    k_param, k_z = jax.random.split(key)

    batch_size = 8
    param_dim = 16
    hidden_dim = 32

    w1, b1, w2, b2 = init_params(k_param, param_dim, hidden_dim)

    # z_ep ~ N(0, I) * 0.1, mirroring sample_base()
    z_ep = 0.1 * jax.random.normal(k_z, (batch_size, param_dim), dtype=jnp.float32)

    phi, log_det = simple_epistemic_forward(z_ep, w1, b1, w2, b2)
    jax.block_until_ready((phi, log_det))

    phi_ref, log_det_ref = reference_forward(z_ep, w1, b1, w2, b2)
    assert phi.shape == (batch_size, param_dim)
    assert log_det.shape == (batch_size,)
    assert jnp.allclose(phi, phi_ref, atol=1e-5, rtol=1e-5)
    assert jnp.allclose(log_det, log_det_ref, atol=1e-5, rtol=1e-5)

    print("KERNEL_OK")
</pallas_src>

<mosaic_0001>
module attributes {stable_mosaic.version = 11 : i64} {
  func.func @_epistemic_kernel(%arg0: i32, %arg1: memref<8x16xf32, #tpu.memory_space<vmem>>, %arg2: memref<17x32xf32, #tpu.memory_space<vmem>>, %arg3: memref<33x32xf32, #tpu.memory_space<vmem>>, %arg4: memref<8x16xf32, #tpu.memory_space<vmem>>, %arg5: memref<8x1xf32, #tpu.memory_space<vmem>>) attributes {dimension_semantics = [#tpu.dimension_semantics<parallel>], iteration_bounds = array<i64: 1>, scalar_prefetch = 0 : i64, scratch_operands = 0 : i64, tpu.core_type = #tpu.core_type<tc>, window_params = [{transform_indices = @transform_0, window_bounds = array<i64: 8, 16>}, {pipeline_mode = #tpu.pipeline_mode<synchronous>, transform_indices = @transform_1, window_bounds = array<i64: 17, 32>}, {pipeline_mode = #tpu.pipeline_mode<synchronous>, transform_indices = @transform_2, window_bounds = array<i64: 33, 32>}, {transform_indices = @transform_3, window_bounds = array<i64: 8, 16>}, {transform_indices = @transform_4, window_bounds = array<i64: 8, 1>}]} {
    %c0 = arith.constant 0 : index
    %c0_0 = arith.constant 0 : index
    %0 = vector.load %arg1[%c0, %c0_0] : memref<8x16xf32, #tpu.memory_space<vmem>>, vector<8x16xf32>
    %c0_1 = arith.constant 0 : index
    %c0_2 = arith.constant 0 : index
    %1 = vector.load %arg2[%c0_1, %c0_2] : memref<17x32xf32, #tpu.memory_space<vmem>>, vector<16x32xf32>
    %c16 = arith.constant 16 : index
    %c0_3 = arith.constant 0 : index
    %2 = vector.load %arg2[%c16, %c0_3] : memref<17x32xf32, #tpu.memory_space<vmem>>, vector<1x32xf32>
    %cst = arith.constant dense<0.000000e+00> : vector<8x32xf32>
    %3 = tpu.matmul %0, %1, %cst {dimension_numbers = #tpu.dot_dimension_numbers<[1], [0], [0], [1], [0, 0, 1, 1], [], []>} : vector<8x16xf32>, vector<16x32xf32>, vector<8x32xf32> -> vector<8x32xf32>
    %4 = vector.broadcast %2 : vector<1x32xf32> to vector<8x32xf32>
    %5 = arith.addf %3, %4 : vector<8x32xf32>
    %6 = math.tanh %5 : vector<8x32xf32>
    %c0_4 = arith.constant 0 : index
    %c0_5 = arith.constant 0 : index
    %7 = vector.load %arg3[%c0_4, %c0_5] : memref<33x32xf32, #tpu.memory_space<vmem>>, vector<32x32xf32>
    %c32 = arith.constant 32 : index
    %c0_6 = arith.constant 0 : index
    %8 = vector.load %arg3[%c32, %c0_6] : memref<33x32xf32, #tpu.memory_space<vmem>>, vector<1x32xf32>
    %cst_7 = arith.constant dense<0.000000e+00> : vector<8x32xf32>
    %9 = tpu.matmul %6, %7, %cst_7 {dimension_numbers = #tpu.dot_dimension_numbers<[1], [0], [0], [1], [0, 0, 1, 1], [], []>} : vector<8x32xf32>, vector<32x32xf32>, vector<8x32xf32> -> vector<8x32xf32>
    %10 = vector.broadcast %8 : vector<1x32xf32> to vector<8x32xf32>
    %11 = arith.addf %9, %10 : vector<8x32xf32>
    %12 = vector.extract_strided_slice %11 {offsets = [0, 0], sizes = [8, 16], strides = [1, 1]} : vector<8x32xf32> to vector<8x16xf32>
    %13 = math.tanh %12 : vector<8x16xf32>
    %cst_8 = arith.constant 1.000000e-01 : f32
    %14 = vector.broadcast %cst_8 : f32 to vector<8x16xf32>
    %15 = arith.mulf %13, %14 : vector<8x16xf32>
    %16 = vector.extract_strided_slice %11 {offsets = [0, 16], sizes = [8, 16], strides = [1, 1]} : vector<8x32xf32> to vector<8x16xf32>
    %17 = math.exp %15 : vector<8x16xf32>
    %18 = arith.mulf %0, %17 : vector<8x16xf32>
    %19 = arith.addf %18, %16 : vector<8x16xf32>
    %c0_9 = arith.constant 0 : index
    %c0_10 = arith.constant 0 : index
    %20 = vector.load %arg4[%c0_9, %c0_10] : memref<8x16xf32, #tpu.memory_space<vmem>>, vector<8x16xf32>
    tpu.vector_store %arg4[%c0_9, %c0_10], %19 {strides = array<i32>} : memref<8x16xf32, #tpu.memory_space<vmem>>, vector<8x16xf32>,
    %cst_11 = arith.constant dense<0.000000e+00> : vector<8xf32>
    %21 = vector.multi_reduction <add>, %15, %cst_11 [1] : vector<8x16xf32> to vector<8xf32>
    %22 = vector.shape_cast %21 : vector<8xf32> to vector<8x1xf32>
    %c0_12 = arith.constant 0 : index
    %c0_13 = arith.constant 0 : index
    %23 = vector.load %arg5[%c0_12, %c0_13] : memref<8x1xf32, #tpu.memory_space<vmem>>, vector<8x1xf32>
    tpu.vector_store %arg5[%c0_12, %c0_13], %22 {strides = array<i32>} : memref<8x1xf32, #tpu.memory_space<vmem>>, vector<8x1xf32>,
    return
  }
  func.func @transform_0(%arg0: i32) -> (i32, i32) {
    %c0_i32 = arith.constant 0 : i32
    %c0_i32_0 = arith.constant 0 : i32
    return %arg0, %c0_i32 : i32, i32
  }
  func.func @transform_1(%arg0: i32) -> (i32, i32) {
    %c0_i32 = arith.constant 0 : i32
    %c0_i32_0 = arith.constant 0 : i32
    %c0_i32_1 = arith.constant 0 : i32
    return %c0_i32, %c0_i32_0 : i32, i32
  }
  func.func @transform_2(%arg0: i32) -> (i32, i32) {
    %c0_i32 = arith.constant 0 : i32
    %c0_i32_0 = arith.constant 0 : i32
    %c0_i32_1 = arith.constant 0 : i32
    return %c0_i32, %c0_i32_0 : i32, i32
  }
  func.func @transform_3(%arg0: i32) -> (i32, i32) {
    %c0_i32 = arith.constant 0 : i32
    %c0_i32_0 = arith.constant 0 : i32
    return %arg0, %c0_i32 : i32, i32
  }
  func.func @transform_4(%arg0: i32) -> (i32, i32) {
    %c0_i32 = arith.constant 0 : i32
    %c0_i32_0 = arith.constant 0 : i32
    return %arg0, %c0_i32 : i32, i32
  }
}

</mosaic_0001>

<bundles_post_ra>
// kernel: tpu_custom_call.1
= control target key start
LH: loop header
LB: loop body
LE: loop exit
PB: predicated region body
PF: predicated region fallthrough
CT: control target
= control target key end

     0   :  { %v291_v2 = vmov 0.0|0.0   ;;  %vm292_vm0 = vmmov 0   ;;  %v293_v4 = vmov 0.0   ;;  %s366_s0 = inlined_call_operand.vmem [shape: f32[8,16], index: 0, kind: input, shape index: {}]   ;;  %s367_s1 = inlined_call_operand.vmem [shape: f32[17,32], index: 1, kind: input, shape index: {}]   ;;  %s368_s2 = inlined_call_operand.vmem [shape: f32[33,32], index: 2, kind: input, shape index: {}]   ;;  %s369_s3 = inlined_call_operand.hbm [shape: f32[8,16], index: 3, kind: output, shape index: {0}]   ;;  %s370_s4 = inlined_call_operand.vmem [shape: f32[8,1], index: 4, kind: output, shape index: {1}]  }
   0x1   :  { %v18_v0 = vld [vmem:[%s367_s1] sm:$0xff]  ;;  %v19_v1 = vld [vmem:[%s367_s1 + $0x8] sm:$0xff]  ;;  %247 = vmatprep.subr.bf16.mxu0 %v291_v2  ;;  %233 = vmatprep.mubr.msk.f32.mxu0 %vm292_vm0, %v293_v4 }
   0x2   :  { %v248_v3 = vpack.c.bf16 %v19_v1, %v18_v0 }
   0x3   :  { %10 = vsyncpa [#allocation3], 0  ;;  %250 = vmatprep.subr.bf16.mxu1 %v291_v2  ;;  %244 = vmatprep.mubr.msk.f32.mxu1 %vm292_vm0, %v293_v4  ;;  %v17_v5 = vld [vmem:[%s366_s0] sm:$0xff]  ;;  %vm25_vm1 = vcmask 130048   ;;  %v101_v7 = vld [vmem:[%s368_s2 + $0x8] sm:$0xff]  ;;  %vm109_vm2 = vcmask 261120  }
   0x4   :  { %249 = vmatpush3.bf16.msra.mxu0 %v248_v3  ;;  %v100_v6 = vld [vmem:[%s368_s2] sm:$0xff]  ;;  %v102_v8 = vld [vmem:[%s368_s2 + $0x10] sm:$0xff]  ;;  %v103_v10 = vld [vmem:[%s368_s2 + $0x18] sm:$0xff]  ;;  %vm197_vm3 = vcmask 7168  }
   0x5   :  { %v251_v9 = vpack.c.bf16 %v101_v7, %v100_v6  ;;  %v254_v11 = vpack.c.bf16 %v103_v10, %v102_v8  ;;  %v217_v12 = vld [vmem:[%s367_s1 + $0x10] ss:$0 sm:$0xff]  ;;  %v219_v17 = vld [vmem:[%s368_s2 + $0x20] ss:$0 sm:$0xff]  ;;  %s294_s1 = smov 112   ;;  %s295_s2 = smov [#allocation2]  }
   0x6   :  { %s205_s8 = sshll.u32 %s295_s2, 4  ;;  %s206_s8 = int_to_ptr.vmem [resolvable:$true] %s205_s8 }
   0x7   :  { %234 = vmatmul.mubr.msk.f32.vlgmr.msra.gmra.mrb[0].mxu0 %vm25_vm1, %v17_v5  ;;  %252 = vmatpush3.bf16.msra.mxu1 %v251_v9  ;;  %s267_s9 = scalar_lea.vmem %s206_s8, 128  ;;  %p272_p1 = scmp.lt.s32.totalorder %s206_s8, %s206_s8 }
   0x8   :  { %253 = vmatprep.subr.bf16.mxu1 %v291_v2  ;;  %p268_p0 = scmp.ne.s32.totalorder %s206_s8, %s267_s9  ;;  %p273_p2 = scmp.lt.s32.totalorder %s267_s9, %s267_s9 }
   0xa   :  { %p274_p3 = por %p273_p2, %p272_p1 }
   0xb   :  { %255 = vmatpush3.bf16.msra.mxu1 %v254_v11 }
   0xc   :  { %p275_p4 = pnand %p274_p3, %p268_p0 }
  0xda   :  { %v95_v13 = vpop.f32.mrb[0].mxu0 }
  0xdb   :  { %v96_v14 = vadd.f32 %v217_v12, %v95_v13  ;;  %v235_v15 = vpop.f32.mrb[1].mxu0 }
  0xdd   :  { %261 = vtanh.f32 %v96_v14 }
  0xe7   :  { %v262_v16 = vpop.eup %261 }
  0xe8   :  { %245 = vmatmul.mubr.msk.f32.vlgmr.msra.gmra.mrb[0].mxu1 %vm109_vm2, %v262_v16 }
 0x1bb   :  { %v179_v18 = vpop.f32.mrb[0].mxu1 }
 0x1bc   :  { %v180_v19 = vadd.f32 %v219_v17, %v179_v18  ;;  %v246_v20 = vpop.f32.mrb[1].mxu1 }
 0x1be   :  { %263 = vtanh.f32 %v180_v19 }
 0x1c8   :  { %v264_v21 = vpop.eup %263 }
 0x1c9   :  { %v184_v22 = vmul.f32 0.1, %v264_v21 }
 0x1cb   :  { %v194_v23 = vsel %vm25_vm1, %v184_v22, 0.0  ;;  %v185_v24 = vmul.f32 1.442695, %v184_v22 }
 0x1cc   :  { %195 = vadd.xlane.f32.xlu0 %v194_v23 }
 0x1cd   :  { %265 = vpow2.f32 %v185_v24 }
 0x1d7   :  { %v266_v25 = vpop.eup %265 }
 0x1d8   :  { %v187_v27 = vmul.f32 %v266_v25, %v17_v5 }
 0x1e2   :  { %189 = vrot.lane.b32.xlu0 %v180_v19, %s294_s1 }
 0x259   :  { %v196_v26 = vpop.xlane.xlu0 %195 }
 0x25a   :  { %198 = vst.msk [vmem:[%s370_s4] sm:$0xff] %vm197_vm3, %v196_v26 }
 0x25d   :  { %v190_v28 = vpop.permute.xlu0 %189 }
 0x25e   :  { %v192_v29 = vadd.f32 %v190_v28, %v187_v27 }
 0x260   :  { %193 = vst.msk [vmem:[#allocation2] sm:$0xff] %vm25_vm1, %v192_v29 }
 0x261   :  { %278 = shalt.err (!%p275_p4)
}
 0x262   :  { %s279_s12 = scalar_lea.hbm %s369_s3, 128 }
 0x263   :  { %p280_p5 = scmp.ne.s32.totalorder %s369_s3, %s279_s12  ;;  %p283_p6 = scmp.lt.u32.totalorder %s279_s12, %s369_s3 }
 0x265   :  { %p285_p7 = pnand %p283_p6, %p280_p5 }
 0x267   :  { %288 = shalt.err (!%p285_p7)
}
 0x268   :  { %208 = dma.vmem_to_hbm [thread:$0]  %s206_s8, 128, %s369_s3, [#allocation3]  }
 0x269   :  { %289 = dma.done.wait [#allocation3], 128  }
 0x26a   :  { %290 = vsyncadd [#allocation3], 4294967168 }
 0x26b   :  { %216 = vsyncpa [#allocation3], 1 }

</bundles_post_ra>
